<compile_context>
chip_gen: v7x
topology: tpu7x:2x2x1
jax: 0.10.0
libtpu: 0.0.40
codegen_flags: <defaults>
</compile_context>

<pallas_src>
import jax
import jax.numpy as jnp
from jax.experimental import pallas as pl
from jax.experimental.pallas import tpu as pltpu

LEAKY_SLOPE = 0.01  # PyTorch nn.LeakyReLU default negative_slope


def _round_up(v, m):
    return ((v + m - 1) // m) * m


def _cdiv(a, b):
    return (a + b - 1) // b


def _gen0_kernel(x_ref, w1_ref, b1_ref, w2_ref, b2_ref, w3_ref, b3_ref, o_ref):
    # Layers 1-2: all operands resident in VMEM (constant index_map).
    # Recomputed per grid step -> every step independent -> "parallel"-safe
    # (v7x megacore splits the w3 column stream across both TensorCores).
    x = x_ref[...]  # f32 [bp, kp]
    h = jnp.dot(x.astype(jnp.bfloat16), w1_ref[...],
                preferred_element_type=jnp.float32) + b1_ref[...]
    h = jnp.where(h > 0, h, LEAKY_SLOPE * h)                       # f32
    h = jnp.dot(h.astype(jnp.bfloat16), w2_ref[...],
                preferred_element_type=jnp.float32) + b2_ref[...]
    h = jnp.where(h > 0, h, LEAKY_SLOPE * h)                       # f32
    # Layer 3 on the currently streamed w3 tile [mp, tn].
    y = jnp.dot(h.astype(jnp.bfloat16), w3_ref[...],
                preferred_element_type=jnp.float32) + b3_ref[...]
    o_ref[...] = jnp.tanh(y).astype(o_ref.dtype)


def prepare_generator0(params, *, tn_max=4096):
    """One-time padding + bf16 cast of weights (call once at init).

    params: w1 [in, mid], b1 [1, mid], w2 [mid, mid], b2 [1, mid],
            w3 [mid, out], b3 [1, out]   (weights pre-transposed vs PyTorch)
    tn_max: upper bound on the layer-3 output tile width (multiple of 128).
    """
    in_dim, mid_dim = params["w1"].shape
    out_dim = params["w3"].shape[1]

    kp = _round_up(in_dim, 128)
    mp = _round_up(mid_dim, 128)
    np_ = _round_up(out_dim, 128)          # minimal lane padding only

    # Pick an EVEN number of near-equal tiles so the 2-way megacore split on
    # v7x is balanced to within one 128-column block, with tn <= tn_max.
    nblocks = np_ // 128
    tn_max_blocks = max(1, tn_max // 128)
    n_tiles = max(2, 2 * _cdiv(nblocks, 2 * tn_max_blocks))
    tn_blocks = _cdiv(nblocks, n_tiles)
    tn = tn_blocks * 128

    def pad2(a, shape, dtype):
        buf = jnp.zeros(shape, dtype)
        return buf.at[: a.shape[0], : a.shape[1]].set(a.astype(dtype))

    prepped = {
        "w1": pad2(params["w1"], (kp, mp), jnp.bfloat16),
        "b1": pad2(params["b1"], (1, mp), jnp.float32),
        "w2": pad2(params["w2"], (mp, mp), jnp.bfloat16),
        "b2": pad2(params["b2"], (1, mp), jnp.float32),
        "w3": pad2(params["w3"], (mp, np_), jnp.bfloat16),
        "b3": pad2(params["b3"], (1, np_), jnp.float32),
    }
    dims = dict(in_dim=in_dim, mid_dim=mid_dim, out_dim=out_dim,
                kp=kp, mp=mp, np=np_, tn=tn)
    return prepped, dims


def generator0_forward(x, prepped, dims):
    """Fused forward pass.  x: [B, in_dim] float32 -> [B, out_dim] float32."""
    B, in_dim = x.shape
    assert in_dim == dims["in_dim"]
    kp, mp, np_, tn = dims["kp"], dims["mp"], dims["np"], dims["tn"]
    bp = _round_up(max(B, 8), 8)

    xp = jnp.zeros((bp, kp), jnp.float32).at[:B, :in_dim].set(
        x.astype(jnp.float32))

    n_tiles = _cdiv(np_, tn)   # last tile may be partial; Pallas clips it

    out_p = pl.pallas_call(
        _gen0_kernel,
        out_shape=jax.ShapeDtypeStruct((bp, np_), jnp.float32),
        grid=(n_tiles,),
        in_specs=[
            pl.BlockSpec((bp, kp), lambda j: (0, 0)),   # x      (resident)
            pl.BlockSpec((kp, mp), lambda j: (0, 0)),   # w1     (resident)
            pl.BlockSpec((1, mp), lambda j: (0, 0)),    # b1     (resident)
            pl.BlockSpec((mp, mp), lambda j: (0, 0)),   # w2     (resident)
            pl.BlockSpec((1, mp), lambda j: (0, 0)),    # b2     (resident)
            pl.BlockSpec((mp, tn), lambda j: (0, j)),   # w3     (streamed)
            pl.BlockSpec((1, tn), lambda j: (0, j)),    # b3     (streamed)
        ],
        out_specs=pl.BlockSpec((bp, tn), lambda j: (0, j)),
        compiler_params=pltpu.CompilerParams(
            dimension_semantics=("parallel",),   # megacore split on v7x
            vmem_limit_bytes=48 << 20,           # stays under v7x 64 MiB
        ),
    )(xp, prepped["w1"], prepped["b1"], prepped["w2"], prepped["b2"],
      prepped["w3"], prepped["b3"])

    return out_p[:B, :dims["out_dim"]]


def init_params(key, in_dim, mid_dim, out_dim):
    """Deterministic synthetic init (PyTorch-Linear-like uniform bounds)."""
    ks = jax.random.split(key, 6)

    def lin(kw, kb, fan_in, fan_out):
        bound = 1.0 / (fan_in ** 0.5)
        # Stored as [fan_in, fan_out] (transposed w.r.t. PyTorch's [out, in]).
        w = jax.random.uniform(kw, (fan_in, fan_out), jnp.float32, -bound, bound)
        b = jax.random.uniform(kb, (1, fan_out), jnp.float32, -bound, bound)
        return w, b

    w1, b1 = lin(ks[0], ks[1], in_dim, mid_dim)
    w2, b2 = lin(ks[2], ks[3], mid_dim, mid_dim)
    w3, b3 = lin(ks[4], ks[5], mid_dim, out_dim)
    return {"w1": w1, "b1": b1, "w2": w2, "b2": b2, "w3": w3, "b3": b3}


def _reference(x, p):
    h = x @ p["w1"] + p["b1"]
    h = jnp.where(h > 0, h, LEAKY_SLOPE * h)
    h = h @ p["w2"] + p["b2"]
    h = jnp.where(h > 0, h, LEAKY_SLOPE * h)
    return jnp.tanh(h @ p["w3"] + p["b3"])


if __name__ == "__main__":
    # Small stand-ins for (in_dim=70, mid_dim=1024, out_dim=120**2) that still
    # exercise the padding paths (70 not lane-aligned, 600 not a 128 multiple)
    # and the streamed grid with a partial, clipped last tile
    # (600 -> np_=640 -> tn=384 -> 2 grid steps, last one 256 valid columns).
    B, IN_DIM, MID_DIM, OUT_DIM = 4, 70, 256, 600

    key = jax.random.PRNGKey(0)
    kx, kp = jax.random.split(key)
    x = jax.random.normal(kx, (B, IN_DIM), dtype=jnp.float32)
    params = init_params(kp, IN_DIM, MID_DIM, OUT_DIM)

    prepped, dims = prepare_generator0(params, tn_max=4096)

    out = generator0_forward(x, prepped, dims)
    out = jax.block_until_ready(out)

    ref = _reference(x, params)
    assert out.shape == (B, OUT_DIM)
    # bf16 weights / f32 activations+accumulation -> tight-ish tolerance.
    assert jnp.allclose(out, ref, atol=1e-2, rtol=1e-2), (
        float(jnp.max(jnp.abs(out - ref))))

    print("KERNEL_OK")
</pallas_src>

<mosaic_0001>
module attributes {stable_mosaic.version = 11 : i64} {
  func.func @_gen0_kernel(%arg0: i32, %arg1: memref<8x128xf32, #tpu.memory_space<vmem>>, %arg2: memref<128x256xbf16, #tpu.memory_space<vmem>>, %arg3: memref<1x256xf32, #tpu.memory_space<vmem>>, %arg4: memref<256x256xbf16, #tpu.memory_space<vmem>>, %arg5: memref<1x256xf32, #tpu.memory_space<vmem>>, %arg6: memref<256x384xbf16, #tpu.memory_space<vmem>>, %arg7: memref<1x384xf32, #tpu.memory_space<vmem>>, %arg8: memref<8x384xf32, #tpu.memory_space<vmem>>) attributes {dimension_semantics = [#tpu.dimension_semantics<parallel>], iteration_bounds = array<i64: 2>, scalar_prefetch = 0 : i64, scratch_operands = 0 : i64, tpu.core_type = #tpu.core_type<tc>, window_params = [{pipeline_mode = #tpu.pipeline_mode<synchronous>, transform_indices = @transform_0, window_bounds = array<i64: 8, 128>}, {pipeline_mode = #tpu.pipeline_mode<synchronous>, transform_indices = @transform_1, window_bounds = array<i64: 128, 256>}, {pipeline_mode = #tpu.pipeline_mode<synchronous>, transform_indices = @transform_2, window_bounds = array<i64: 1, 256>}, {pipeline_mode = #tpu.pipeline_mode<synchronous>, transform_indices = @transform_3, window_bounds = array<i64: 256, 256>}, {pipeline_mode = #tpu.pipeline_mode<synchronous>, transform_indices = @transform_4, window_bounds = array<i64: 1, 256>}, {transform_indices = @transform_5, window_bounds = array<i64: 256, 384>}, {transform_indices = @transform_6, window_bounds = array<i64: 1, 384>}, {transform_indices = @transform_7, window_bounds = array<i64: 8, 384>}]} {
    %c0 = arith.constant 0 : index
    %c0_0 = arith.constant 0 : index
    %0 = vector.load %arg1[%c0, %c0_0] : memref<8x128xf32, #tpu.memory_space<vmem>>, vector<8x128xf32>
    %1 = arith.truncf %0 : vector<8x128xf32> to vector<8x128xbf16>
    %c0_1 = arith.constant 0 : index
    %c0_2 = arith.constant 0 : index
    %2 = vector.load %arg2[%c0_1, %c0_2] : memref<128x256xbf16, #tpu.memory_space<vmem>>, vector<128x256xbf16>
    %cst = arith.constant dense<0.000000e+00> : vector<8x256xf32>
    %3 = tpu.matmul %1, %2, %cst {dimension_numbers = #tpu.dot_dimension_numbers<[1], [0], [0], [1], [0, 0, 1, 1], [], []>} : vector<8x128xbf16>, vector<128x256xbf16>, vector<8x256xf32> -> vector<8x256xf32>
    %c0_3 = arith.constant 0 : index
    %c0_4 = arith.constant 0 : index
    %4 = vector.load %arg3[%c0_3, %c0_4] : memref<1x256xf32, #tpu.memory_space<vmem>>, vector<1x256xf32>
    %5 = vector.broadcast %4 : vector<1x256xf32> to vector<8x256xf32>
    %6 = arith.addf %3, %5 : vector<8x256xf32>
    %cst_5 = arith.constant 0.000000e+00 : f32
    %7 = vector.broadcast %cst_5 : f32 to vector<8x256xf32>
    %8 = arith.cmpf ogt, %6, %7 : vector<8x256xf32>
    %cst_6 = arith.constant 0.00999999977 : f32
    %9 = vector.broadcast %cst_6 : f32 to vector<8x256xf32>
    %10 = arith.mulf %9, %6 : vector<8x256xf32>
    %11 = arith.select %8, %6, %10 : vector<8x256xi1>, vector<8x256xf32>
    %12 = arith.truncf %11 : vector<8x256xf32> to vector<8x256xbf16>
    %c0_7 = arith.constant 0 : index
    %c0_8 = arith.constant 0 : index
    %13 = vector.load %arg4[%c0_7, %c0_8] : memref<256x256xbf16, #tpu.memory_space<vmem>>, vector<256x256xbf16>
    %cst_9 = arith.constant dense<0.000000e+00> : vector<8x256xf32>
    %14 = tpu.matmul %12, %13, %cst_9 {dimension_numbers = #tpu.dot_dimension_numbers<[1], [0], [0], [1], [0, 0, 1, 1], [], []>} : vector<8x256xbf16>, vector<256x256xbf16>, vector<8x256xf32> -> vector<8x256xf32>
    %c0_10 = arith.constant 0 : index
    %c0_11 = arith.constant 0 : index
    %15 = vector.load %arg5[%c0_10, %c0_11] : memref<1x256xf32, #tpu.memory_space<vmem>>, vector<1x256xf32>
    %16 = vector.broadcast %15 : vector<1x256xf32> to vector<8x256xf32>
    %17 = arith.addf %14, %16 : vector<8x256xf32>
    %cst_12 = arith.constant 0.000000e+00 : f32
    %18 = vector.broadcast %cst_12 : f32 to vector<8x256xf32>
    %19 = arith.cmpf ogt, %17, %18 : vector<8x256xf32>
    %cst_13 = arith.constant 0.00999999977 : f32
    %20 = vector.broadcast %cst_13 : f32 to vector<8x256xf32>
    %21 = arith.mulf %20, %17 : vector<8x256xf32>
    %22 = arith.select %19, %17, %21 : vector<8x256xi1>, vector<8x256xf32>
    %23 = arith.truncf %22 : vector<8x256xf32> to vector<8x256xbf16>
    %c0_14 = arith.constant 0 : index
    %c0_15 = arith.constant 0 : index
    %24 = vector.load %arg6[%c0_14, %c0_15] : memref<256x384xbf16, #tpu.memory_space<vmem>>, vector<256x384xbf16>
    %cst_16 = arith.constant dense<0.000000e+00> : vector<8x384xf32>
    %25 = tpu.matmul %23, %24, %cst_16 {dimension_numbers = #tpu.dot_dimension_numbers<[1], [0], [0], [1], [0, 0, 1, 1], [], []>} : vector<8x256xbf16>, vector<256x384xbf16>, vector<8x384xf32> -> vector<8x384xf32>
    %c0_17 = arith.constant 0 : index
    %c0_18 = arith.constant 0 : index
    %26 = vector.load %arg7[%c0_17, %c0_18] : memref<1x384xf32, #tpu.memory_space<vmem>>, vector<1x384xf32>
    %27 = vector.broadcast %26 : vector<1x384xf32> to vector<8x384xf32>
    %28 = arith.addf %25, %27 : vector<8x384xf32>
    %29 = math.tanh %28 : vector<8x384xf32>
    %c0_19 = arith.constant 0 : index
    %c0_20 = arith.constant 0 : index
    %30 = vector.load %arg8[%c0_19, %c0_20] : memref<8x384xf32, #tpu.memory_space<vmem>>, vector<8x384xf32>
    tpu.vector_store %arg8[%c0_19, %c0_20], %29 {strides = array<i32>} : memref<8x384xf32, #tpu.memory_space<vmem>>, vector<8x384xf32>,
    return
  }
  func.func @transform_0(%arg0: i32) -> (i32, i32) {
    %c0_i32 = arith.constant 0 : i32
    %c0_i32_0 = arith.constant 0 : i32
    %c0_i32_1 = arith.constant 0 : i32
    return %c0_i32, %c0_i32_0 : i32, i32
  }
  func.func @transform_1(%arg0: i32) -> (i32, i32) {
    %c0_i32 = arith.constant 0 : i32
    %c0_i32_0 = arith.constant 0 : i32
    %c0_i32_1 = arith.constant 0 : i32
    return %c0_i32, %c0_i32_0 : i32, i32
  }
  func.func @transform_2(%arg0: i32) -> (i32, i32) {
    %c0_i32 = arith.constant 0 : i32
    %c0_i32_0 = arith.constant 0 : i32
    %c0_i32_1 = arith.constant 0 : i32
    return %c0_i32, %c0_i32_0 : i32, i32
  }
  func.func @transform_3(%arg0: i32) -> (i32, i32) {
    %c0_i32 = arith.constant 0 : i32
    %c0_i32_0 = arith.constant 0 : i32
    %c0_i32_1 = arith.constant 0 : i32
    return %c0_i32, %c0_i32_0 : i32, i32
  }
  func.func @transform_4(%arg0: i32) -> (i32, i32) {
    %c0_i32 = arith.constant 0 : i32
    %c0_i32_0 = arith.constant 0 : i32
    %c0_i32_1 = arith.constant 0 : i32
    return %c0_i32, %c0_i32_0 : i32, i32
  }
  func.func @transform_5(%arg0: i32) -> (i32, i32) {
    %c0_i32 = arith.constant 0 : i32
    %c0_i32_0 = arith.constant 0 : i32
    return %c0_i32, %arg0 : i32, i32
  }
  func.func @transform_6(%arg0: i32) -> (i32, i32) {
    %c0_i32 = arith.constant 0 : i32
    %c0_i32_0 = arith.constant 0 : i32
    return %c0_i32, %arg0 : i32, i32
  }
  func.func @transform_7(%arg0: i32) -> (i32, i32) {
    %c0_i32 = arith.constant 0 : i32
    %c0_i32_0 = arith.constant 0 : i32
    return %c0_i32, %arg0 : i32, i32
  }
}

</mosaic_0001>

<bundles_post_ra>
// kernel: tpu_custom_call.1
= control target key start
LH: loop header
LB: loop body
LE: loop exit
PB: predicated region body
PF: predicated region fallthrough
CT: control target
= control target key end

     0   :  { %12 = vsyncpa [#allocation3], 0  ;;  %s2319_s0 = inlined_call_operand.hbm [shape: f32[8,128], index: 0, kind: input, shape index: {}]   ;;  %s2320_s1 = inlined_call_operand.hbm [shape: bf16[128,256], index: 1, kind: input, shape index: {}]   ;;  %s2321_s2 = inlined_call_operand.vmem [shape: f32[1,256], index: 2, kind: input, shape index: {}]   ;;  %s2322_s3 = inlined_call_operand.hbm [shape: bf16[256,256], index: 3, kind: input, shape index: {}]   ;;  %s2323_s4 = inlined_call_operand.vmem [shape: f32[1,256], index: 4, kind: input, shape index: {}]   ;;  %s2324_s5 = inlined_call_operand.hbm [shape: bf16[256,640], index: 5, kind: input, shape index: {}]   ;;  %s2325_s6 = inlined_call_operand.vmem [shape: f32[1,640], index: 6, kind: input, shape index: {}]   ;;  %s2326_s7 = inlined_call_operand.hbm [shape: f32[8,640], index: 7, kind: output, shape index: {}]  }
   0x1   :  { %13 = vsyncpa [#allocation6], 0 }
   0x2   :  { %14 = vsyncpa [#allocation9], 0 }
   0x3   :  { %16 = vsyncpa [#allocation9 + $0x1], 0 }
   0x4   :  { %17 = vsyncpa [#allocation4], 0 }
   0x5   :  { %19 = vsyncpa [#allocation4 + $0x1], 0  ;;  %s1966_s24 = smov 0   ;;  %s1968_s25 = smov 0  }
   0x6   :  { %s1970_s26 = smov 0   ;;  %s1972_s27 = smov 0  }
   0x7 LB: > { %2335 = sst [smem:[#allocation15_spill]] %s1902_s24  ;;  %s1987_s28 = sadd.s32 4294967295, %s1914_s27   ;;  %s1914_s27 = sphi %s1972_s27, %s2358_s27   ;;  %s1910_s26 = sphi %s1970_s26, %s2362_s26   ;;  %s1906_s25 = sphi %s1968_s25, %s2361_s25   ;;  %s1902_s24 = sphi %s1966_s24, %s2360_s24  }
   0x8   : > { %s1363_s29 = sadd.s32 4294967294, %s1914_s27   ;;  %s1991_s30 = sadd.s32 1, %s1914_s27  }
   0x9   : > { %2336 = sst [smem:[#allocation16_spill]] %s1991_s30  ;;  %s137_s8 = sadd.s32 1, %s1910_s26 }
   0xa   : > { %s134_s9 = ssub.s32 %s1914_s27, %s1991_s30  ;;  %p144_p0 = scmp.ne.s32.totalorder %s1910_s26, %s1906_s25 }
   0xb   : > { %p135_p1 = scmp.eq.s32.totalorder %s134_s9, 0  ;;  %p145_p2 = scmp.eq.s32.totalorder %s1914_s27, 0 }
   0xc   : > { %p150_p3 = scmp.ne.s32.totalorder %s1906_s25, %s1902_s24  ;;  %p2327_p4 = scmp.eq.s32.totalorder %s1987_s28, 0 }
   0xd   : > { %s2003_s10 = scalar_select %p135_p1, %s1910_s26, %s137_s8  }
   0xe   : > { %p2005_p5 = por %p145_p2, %p144_p0  ;;  %p2011_p6 = por %p2327_p4, %p150_p3 }
   0xf   : > { %2337 = sst [smem:[#allocation17_spill]] %s2003_s10  ;;  %p200_p7 = scmp.eq.s32.totalorder %s1987_s28, 1 }
  0x10   : > { %s2338_s11 = scalar_select %p2005_p5, 1, 0 }
  0x11   : > { %s2339_s12 = scalar_select %p2011_p6, 1, 0 }
  0x12   : > { %p206_p8 = scmp.eq.s32.totalorder %s1363_s29, 1  ;;  %p1364_p9 = scmp.ge.s32.totalorder %s1914_s27, 1 }
  0x13   : > { %p213_p10 = scmp.lt.s32.totalorder %s1914_s27, 3  ;;  %p2018_p11 = por %p200_p7, %p144_p0 }
  0x14   : > { %p2022_p12 = por %p206_p8, %p150_p3  ;;  %s1916_s16 = smov [#allocation5]  }
  0x15   : > { %s2340_s13 = scalar_select %p2018_p11, 1, 0 }
  0x16   : > { %s2341_s14 = scalar_select %p2022_p12, 1, 0 }
  0x17   : > { %p2026_p13 = pnand %p1364_p9, %p213_p10  ;;  %s236_s17 = sshll.u32 %s1916_s16, 4  ;;  %s237_s17 = int_to_ptr.vmem [resolvable:$true] %s236_s17 }
  0x18   : > { %2342 = sst [smem:[#allocation18_spill]] %s2341_s14  ;;  %s1917_s19 = smov [#allocation2]  }
  0x19   : > { %s2343_s15 = scalar_select %p2026_p13, 1, 0 }
  0x1a   : > { %p1525_p1 = pneg %p2026_p13  ;;  %s226_s20 = sshll.u32 %s1917_s19, 4  ;;  %s2038_s20 = int_to_ptr.vmem [resolvable:$true] %s226_s20 }
  0x1b   : > { %s1728_s23 = scalar_lea.hbm %s2320_s1, 2048 }
  0x1c   : > { %p2034_p2 = pnand %p1525_p1, %p2327_p4  ;;  %p1729_p0 = scmp.ne.s32.totalorder %s2320_s1, %s1728_s23 }
  0x1d   : > { %p1735_p9 = scmp.lt.u32.totalorder %s1728_s23, %s2320_s1 }
  0x1e   : > { %p2048_p3 = pneg %p2034_p2 }
  0x20   : > { %p1731_p7 = pnand %p2048_p3, %p1729_p0 }
  0x22   : > { %p1732_p8 = pneg %p1731_p7 }
  0x24   : > { %p1737_p10 = pnand %p1735_p9, %p1732_p8 }
  0x26   : > { %1740 = shalt.err (!%p1737_p10)
}
  0x27   : > { %s1741_s21 = scalar_lea.vmem %s237_s17, 2048  ;;  %p1749_p11 = scmp.lt.s32.totalorder %s237_s17, %s237_s17 }
  0x28   : > { %p1742_p1 = scmp.ne.s32.totalorder %s237_s17, %s1741_s21  ;;  %p1750_p6 = scmp.lt.s32.totalorder %s1741_s21, %s1741_s21 }
  0x2a   : > { %p1744_p4 = pnand %p1742_p1, %p2048_p3  ;;  %p1751_p13 = por %p1750_p6, %p1749_p11 }
  0x2c   : > { %p1745_p12 = pneg %p1744_p4 }
  0x2e   : > { %p1752_p5 = pnand %p1751_p13, %p1745_p12 }
  0x30   : > { %1755 = shalt.err (!%p1752_p5)
}
  0x31   : > { %s2334_s22 = smov 128   ;;  %s1919_s29 = smov 8  }
  0x32   : > { %1531 = dma.hbm_to_vmem [thread:$0]  (!%p2034_p2), %s2320_s1, 2048, %s237_s17, [#allocation6], %s2334_s22, %s2334_s22, %s1919_s29  }
  0x33   : > { %s1756_s10 = scalar_lea.hbm %s2319_s0, 128 }
  0x34   : > { %p1757_p4 = scmp.ne.s32.totalorder %s2319_s0, %s1756_s10  ;;  %p1763_p11 = scmp.lt.u32.totalorder %s1756_s10, %s2319_s0 }
  0x36   : > { %p1759_p5 = pnand %p1757_p4, %p2048_p3 }
  0x38   : > { %p1760_p6 = pneg %p1759_p5 }
  0x3a   : > { %p1765_p12 = pnand %p1763_p11, %p1760_p6 }
  0x3c   : > { %1768 = shalt.err (!%p1765_p12)
}
  0x3d   : > { %s1769_s17 = scalar_lea.vmem %s2038_s20, 128  ;;  %p1777_p8 = scmp.lt.s32.totalorder %s2038_s20, %s2038_s20 }
  0x3e   : > { %p1770_p13 = scmp.ne.s32.totalorder %s2038_s20, %s1769_s17  ;;  %p1778_p9 = scmp.lt.s32.totalorder %s1769_s17, %s1769_s17 }
  0x40   : > { %p1772_p0 = pnand %p1770_p13, %p2048_p3  ;;  %p1779_p10 = por %p1778_p9, %p1777_p8 }
  0x42   : > { %p1773_p7 = pneg %p1772_p0 }
  0x44   : > { %p1780_p1 = pnand %p1779_p10, %p1773_p7 }
  0x46   : > { %1783 = shalt.err (!%p1780_p1)
}
  0x47   : > { %1528 = dma.hbm_to_vmem [thread:$0]  (!%p2034_p2), %s2319_s0, 128, %s2038_s20, [#allocation3]  }
  0x48   : > { %s1920_s10 = smov [#allocation7]   ;;  %s1784_s16 = scalar_lea.hbm %s2322_s3, 4096 }
  0x49   : > { %s252_s14 = sshll.u32 %s1920_s10, 4  ;;  %p1785_p4 = scmp.ne.s32.totalorder %s2322_s3, %s1784_s16  ;;  %s253_s14 = int_to_ptr.vmem [resolvable:$true] %s252_s14 }
  0x4a   : > { %p1791_p11 = scmp.lt.u32.totalorder %s1784_s16, %s2322_s3 }
  0x4b   : > { %p1787_p5 = pnand %p1785_p4, %p2048_p3 }
  0x4d   : > { %p1788_p6 = pneg %p1787_p5 }
  0x4f   : > { %p1793_p12 = pnand %p1791_p11, %p1788_p6 }
  0x51   : > { %1796 = shalt.err (!%p1793_p12)
}
  0x52   : > { %s1797_s20 = scalar_lea.vmem %s253_s14, 4096  ;;  %p1805_p8 = scmp.lt.s32.totalorder %s253_s14, %s253_s14 }
  0x53   : > { %p1798_p13 = scmp.ne.s32.totalorder %s253_s14, %s1797_s20  ;;  %p1806_p9 = scmp.lt.s32.totalorder %s1797_s20, %s1797_s20 }
  0x55   : > { %p1800_p0 = pnand %p1798_p13, %p2048_p3  ;;  %p1807_p10 = por %p1806_p9, %p1805_p8 }
  0x57   : > { %p1801_p7 = pneg %p1800_p0 }
  0x59   : > { %p1808_p1 = pnand %p1807_p10, %p1801_p7 }
  0x5b   : > { %1811 = shalt.err (!%p1808_p1)
}
  0x5c   : > { %s2346_s24 = smov 128   ;;  %p1368_p4 = scmp.ge.s32.totalorder %s1914_s27, 2 }
  0x5d   : > { %1534 = dma.hbm_to_vmem [thread:$0]  (!%p2034_p2), %s2322_s3, 4096, %s253_s14, [#allocation6], %s2346_s24, %s2346_s24, %s1919_s29  }
  0x5e   : > { %265 = sbr.rel (%p1368_p4) target bundleno = 136 (0x88), region = 36  ;;  %p2347_p3 = scmp.ne.s32.totalorder (!%p1368_p4), %s2338_s11, 0 }
  0x65   : > { %268 = sbr.rel (!%p2347_p3) target bundleno = 136 (0x88), region = 40  ;;  %s269_s9 = sand.u32 (%p2347_p3), 1, %s1910_s26  }
  0x66   : > { %s274_s10 = smul.u32 (%p2347_p3), 3, %s1914_s27  ;;  %s2124_s14 = scalar_lea.sflag (%p2347_p3), [#allocation9], %s269_s9 }
  0x67   : > { %s1508_s18 = smul.u32 (%p2347_p3), 384, %s269_s9 }
  0x68   : > { %s275_s23 = ssub.s32 (%p2347_p3), 5, %s274_s10 }
  0x69   : > { %p276_p5 = scmp.lt.s32.totalorder (%p2347_p3), %s275_s23, 3  ;;  %s273_s16 = scalar_lea.vmem (%p2347_p3), [#allocation8], %s1508_s18 }
  0x6c   : > { %s2364_s23 = smov (!%p276_p5, %s275_s23), 3 }
  0x6d   : > { %s2121_s8 = sshll.u32 %s2364_s23, 11 }
  0x6e   : > { %s280_s29 = ssub.s32 6144, %s2121_s8 }
  0x6f   : > { %281 = vsyncadd %s2124_s14, %s280_s29  ;;  %p1370_p2 = scmp.ne.s32.totalorder %s2121_s8, 0  ;;  %s1482_s11 = smul.u32 192, %s1914_s27 }
  0x70   : > { %s1372_s19 = sshll.u32 %s2364_s23, 2  ;;  %s287_s21 = sshll.u32 %s273_s16, 4  ;;  %s2135_s21 = int_to_ptr.vmem [resolvable:$true] %s287_s21 }
  0x71   : > { %s2133_s24 = scalar_lea.hbm %s2324_s5, %s1482_s11  ;;  %s1816_s10 = scalar_lea.hbm %s2324_s5, 10240 }
  0x72   : > { %s1812_s22 = scalar_lea.hbm %s2133_s24, %s2121_s8  ;;  %p1817_p13 = scmp.lt.u32.totalorder %s2133_s24, %s2324_s5 }
  0x73   : > { %p1813_p6 = scmp.ne.s32.totalorder %s2133_s24, %s1812_s22  ;;  %p1818_p0 = scmp.lt.u32.totalorder %s1816_s10, %s1812_s22 }
  0x74   : > { %p1820_p8 = scmp.lt.u32.totalorder %s1812_s22, %s2133_s24 }
  0x75   : > { %p1814_p11 = pnand %p1813_p6, %p1370_p2  ;;  %p1819_p7 = por %p1818_p0, %p1817_p13 }
  0x77   : > { %p1815_p12 = pneg %p1814_p11  ;;  %p1821_p9 = por %p1820_p8, %p1819_p7 }
  0x79   : > { %p1822_p10 = pnand %p1821_p9, %p1815_p12 }
  0x7b   : > { %1825 = shalt.err (!%p1822_p10)
}
  0x7c   : > { %s1826_s16 = scalar_lea.vmem %s2135_s21, %s2121_s8  ;;  %s1921_s11 = smov [#allocation8]  }
  0x7d   : > { %p1827_p1 = scmp.ne.s32.totalorder %s2135_s21, %s1826_s16  ;;  %s1830_s17 = sshll.u32 %s1921_s11, 4  ;;  %s1831_s17 = int_to_ptr.vmem [resolvable:$false] %s1830_s17 }
  0x7e   : > { %s1832_s20 = scalar_lea.vmem %s1831_s17, 12288  ;;  %p1833_p6 = scmp.lt.s32.totalorder %s2135_s21, %s1831_s17 }
  0x7f   : > { %p1828_p3 = pnand %p1827_p1, %p1370_p2  ;;  %p1834_p11 = scmp.lt.s32.totalorder %s1832_s20, %s1826_s16 }
  0x81   : > { %p1829_p5 = pneg %p1828_p3  ;;  %p1835_p13 = por %p1834_p11, %p1833_p6 }
  0x83   : > { %p1836_p0 = pnand %p1835_p13, %p1829_p5 }
  0x85   : > { %1839 = shalt.err (!%p1836_p0)
}
  0x86   : > { %s1922_s22 = smov 320   ;;  %s1923_s30 = smov 192  }
  0x87   : > { %293 = dma.hbm_to_vmem [thread:$0]  (%p1370_p2), %s2133_s24, %s2121_s8, %s2135_s21, %s2124_s14, %s1922_s22, %s1923_s30, %s1372_s19  }
  0x88 PF: > { %p2348_p12 = scmp.ne.s32.totalorder %s2343_s15, 0 }
  0x89   : > { %p2349_p7 = scmp.eq.s32.totalorder (!%p2348_p12), %s1987_s28, 0 }
  0x8a   : > { %315 = sbr.rel (%p2348_p12) target bundleno = 885 (0x375), region = 48 }
  0x91   : > { %1885 = dma.done.wait (%p2349_p7), [#allocation3], 128   ;;  %p2350_p8 = pmov %p2349_p7 }
  0x92   : > { %p2351_p9 = pmov %p2349_p7 }
  0x93   : > { %1887 = vsyncadd (%p2350_p8), [#allocation3], 4294967168 }
  0x94   : > { %1889 = dma.done.wait (%p2351_p9), [#allocation6], 6144   ;;  %p2352_p10 = pmov %p2349_p7 }
  0x95   : > { %s2175_s23 = sand.u32 1, %s1906_s25   ;;  %p2353_p2 = scmp.ne.s32.totalorder %s2339_s12, 0 }
  0x96   : > { %1891 = vsyncadd (%p2352_p10), [#allocation6], 4294961152  ;;  %s1509_s15 = smul.u32 384, %s2175_s23  ;;  %s330_s8 = scalar_lea.sflag [#allocation9], %s2175_s23 }
  0x98   : > { %s2179_s14 = scalar_lea.vmem [#allocation8], %s1509_s15 }
  0x99   : > { %1893 = dma.done.wait (%p2353_p2), %s330_s8, 6144  }
  0x9a   : > { %1895 = vsyncadd (%p2353_p2), %s330_s8, 4294961152  ;;  %v1924_v0 = vmov 0   ;;  %v1586_v1 = vld [vmem:[#allocation5 + $0x4] ss:$8 sps:$4 sm:$0xff]   ;;  %v1588_v2 = vld [vmem:[#allocation5] ss:$8 sps:$4 sm:$0xff]  }
  0x9b   : > { %538 = vmatprep.mubr.bf16.mxu0 %v1924_v0  ;;  %506 = vmatprep.subr.bf16.mxu0 %v1586_v1  ;;  %v1589_v3 = vld [vmem:[#allocation5 + $0x14] ss:$8 sps:$4 sm:$0xff]   ;;  %v1591_v4 = vld [vmem:[#allocation5 + $0x10] ss:$8 sps:$4 sm:$0xff]   ;;  %v1592_v5 = vld [vmem:[#allocation5 + $0x24] ss:$8 sps:$4 sm:$0xff]  }
  0x9c   : > { %507 = vmatpush1.bf16.msra.mxu0 %v1588_v2  ;;  %v1594_v6 = vld [vmem:[#allocation5 + $0x20] ss:$8 sps:$4 sm:$0xff]   ;;  %v1595_v7 = vld [vmem:[#allocation5 + $0x34] ss:$8 sps:$4 sm:$0xff]   ;;  %v1597_v8 = vld [vmem:[#allocation5 + $0x30] ss:$8 sps:$4 sm:$0xff]  }
  0x9d   : > { %508 = vmatprep.subr.bf16.mxu0 %v1589_v3  ;;  %v1598_v9 = vld [vmem:[#allocation5 + $0x44] ss:$8 sps:$4 sm:$0xff]   ;;  %v1612_v11 = vld [vmem:[#allocation7] ss:$8 sps:$4 sm:$0xff]   ;;  %v1613_v12 = vld [vmem:[#allocation7 + $0x14] ss:$8 sps:$4 sm:$0xff]  }
  0x9e   : > { %v1610_v10 = vld [vmem:[#allocation7 + $0x4] ss:$8 sps:$4 sm:$0xff]   ;;  %v1600_v13 = vld [vmem:[#allocation5 + $0x40] ss:$8 sps:$4 sm:$0xff]   ;;  %v1615_v14 = vld [vmem:[#allocation7 + $0x10] ss:$8 sps:$4 sm:$0xff]  }
  0x9f   : > { %759 = vmatprep.subr.bf16.mxu1 %v1610_v10  ;;  %v1616_v15 = vld [vmem:[#allocation7 + $0x24] ss:$8 sps:$4 sm:$0xff]   ;;  %v1601_v16 = vld [vmem:[#allocation5 + $0x54] ss:$8 sps:$4 sm:$0xff]   ;;  %v1603_v17 = vld [vmem:[#allocation5 + $0x50] ss:$8 sps:$4 sm:$0xff]  }
  0xa0   : > { %509 = vmatpush1.bf16.msra.mxu0 %v1591_v4  ;;  %760 = vmatpush1.bf16.msra.mxu1 %v1612_v11  ;;  %v1618_v18 = vld [vmem:[#allocation7 + $0x20] ss:$8 sps:$4 sm:$0xff]   ;;  %v1619_v19 = vld [vmem:[#allocation7 + $0x34] ss:$8 sps:$4 sm:$0xff]   ;;  %v1604_v20 = vld [vmem:[#allocation5 + $0x64] ss:$8 sps:$4 sm:$0xff]  }
  0xa1   : > { %510 = vmatprep.subr.bf16.mxu0 %v1592_v5  ;;  %761 = vmatprep.subr.bf16.mxu1 %v1613_v12  ;;  %v1606_v21 = vld [vmem:[#allocation5 + $0x60] ss:$8 sps:$4 sm:$0xff]   ;;  %v1621_v22 = vld [vmem:[#allocation7 + $0x30] ss:$8 sps:$4 sm:$0xff]   ;;  %v1622_v23 = vld [vmem:[#allocation7 + $0x44] ss:$8 sps:$4 sm:$0xff]  }
  0xa2   : > { %v1607_v24 = vld [vmem:[#allocation5 + $0x74] ss:$8 sps:$4 sm:$0xff]   ;;  %v1609_v25 = vld [vmem:[#allocation5 + $0x70] ss:$8 sps:$4 sm:$0xff]   ;;  %v1624_v27 = vld [vmem:[#allocation7 + $0x40] ss:$8 sps:$4 sm:$0xff]  }
  0xa3   : > { %v396_v26 = vld [vmem:[#allocation2] sm:$0xff]  ;;  %v1628_v30 = vld [vmem:[#allocation7 + $0x64] ss:$8 sps:$4 sm:$0xff]   ;;  %v1630_v32 = vld [vmem:[#allocation7 + $0x60] ss:$8 sps:$4 sm:$0xff]   ;;  %s2252_s9 = smul.u32 3, %s1987_s28 }
  0xa4   : > { %511 = vmatpush1.bf16.msra.mxu0 %v1594_v6  ;;  %762 = vmatpush1.bf16.msra.mxu1 %v1615_v14  ;;  %v1625_v28 = vld [vmem:[#allocation7 + $0x54] ss:$8 sps:$4 sm:$0xff]   ;;  %v1627_v29 = vld [vmem:[#allocation7 + $0x50] ss:$8 sps:$4 sm:$0xff]   ;;  %v397_v31 = vpack.c.bf16 %v396_v26, %v396_v26  ;;  %v1634_v35 = vld [vmem:[#allocation7 + $0x84] ss:$8 sps:$4 sm:$0xff]  }
  0xa5   : > { %512 = vmatprep.subr.bf16.mxu0 %v1595_v7  ;;  %763 = vmatprep.subr.bf16.mxu1 %v1616_v15  ;;  %v1631_v33 = vld [vmem:[#allocation7 + $0x74] ss:$8 sps:$4 sm:$0xff]   ;;  %v1633_v34 = vld [vmem:[#allocation7 + $0x70] ss:$8 sps:$4 sm:$0xff]   ;;  %v1636_v36 = vld [vmem:[#allocation7 + $0x80] ss:$8 sps:$4 sm:$0xff]  }
  0xa6   : > { %v1637_v37 = vld [vmem:[#allocation7 + $0x94] ss:$8 sps:$4 sm:$0xff]   ;;  %v1639_v38 = vld [vmem:[#allocation7 + $0x90] ss:$8 sps:$4 sm:$0xff]   ;;  %v1640_v39 = vld [vmem:[#allocation7 + $0xa4] ss:$8 sps:$4 sm:$0xff]  }
  0xa7   : > { %v1642_v40 = vld [vmem:[#allocation7 + $0xa0] ss:$8 sps:$4 sm:$0xff]   ;;  %v1643_v41 = vld [vmem:[#allocation7 + $0xb4] ss:$8 sps:$4 sm:$0xff]   ;;  %v1645_v42 = vld [vmem:[#allocation7 + $0xb0] ss:$8 sps:$4 sm:$0xff]  }
  0xa8   : > { %513 = vmatpush1.bf16.msra.mxu0 %v1597_v8  ;;  %764 = vmatpush1.bf16.msra.mxu1 %v1618_v18  ;;  %v1646_v43 = vld [vmem:[#allocation7 + $0xc4] ss:$8 sps:$4 sm:$0xff]   ;;  %v1648_v44 = vld [vmem:[#allocation7 + $0xc0] ss:$8 sps:$4 sm:$0xff]   ;;  %v1649_v45 = vld [vmem:[#allocation7 + $0xd4] ss:$8 sps:$4 sm:$0xff]  }
  0xa9   : > { %514 = vmatprep.subr.bf16.mxu0 %v1598_v9  ;;  %765 = vmatprep.subr.bf16.mxu1 %v1619_v19  ;;  %v1651_v46 = vld [vmem:[#allocation7 + $0xd0] ss:$8 sps:$4 sm:$0xff]   ;;  %v1652_v47 = vld [vmem:[#allocation7 + $0xe4] ss:$8 sps:$4 sm:$0xff]   ;;  %v1654_v48 = vld [vmem:[#allocation7 + $0xe0] ss:$8 sps:$4 sm:$0xff]  }
  0xaa   : > { %v1655_v49 = vld [vmem:[#allocation7 + $0xf4] ss:$8 sps:$4 sm:$0xff]   ;;  %v1657_v50 = vld [vmem:[#allocation7 + $0xf0] ss:$8 sps:$4 sm:$0xff]   ;;  %v1658_v51 = vld [vmem:[%s2179_s14] ss:$12 sps:$4 sm:$0xff]  }
  0xab   : > { %v1660_v52 = vld [vmem:[%s2179_s14 + $0x4] ss:$12 sps:$4 sm:$0xff]   ;;  %v1663_v53 = vld [vmem:[%s2179_s14 + $0x1c] ss:$12 sps:$4 sm:$0xff]   ;;  %v1666_v55 = vld [vmem:[%s2179_s14 + $0x34] ss:$12 sps:$4 sm:$0xff]  }
  0xac   : > { %515 = vmatpush1.bf16.msra.mxu0 %v1600_v13  ;;  %766 = vmatpush1.bf16.msra.mxu1 %v1621_v22  ;;  %v1661_v54 = vld [vmem:[%s2179_s14 + $0x18] ss:$12 sps:$4 sm:$0xff]   ;;  %v1685_v56 = vld [vmem:[%s2179_s14 + $0xc8] ss:$12 sps:$4 sm:$0xff]   ;;  %v1664_v57 = vld [vmem:[%s2179_s14 + $0x30] ss:$12 sps:$4 sm:$0xff]  }
  0xad   : > { %516 = vmatprep.subr.bf16.mxu0 %v1601_v16  ;;  %767 = vmatprep.subr.bf16.mxu1 %v1622_v23  ;;  %v1669_v58 = vld [vmem:[%s2179_s14 + $0x4c] ss:$12 sps:$4 sm:$0xff]   ;;  %v1667_v59 = vld [vmem:[%s2179_s14 + $0x48] ss:$12 sps:$4 sm:$0xff]   ;;  %v1672_v60 = vld [vmem:[%s2179_s14 + $0x64] ss:$12 sps:$4 sm:$0xff]   ;;  %v416_v16 = vlaneseq }
  0xae   : > { %v1670_v61 = vld [vmem:[%s2179_s14 + $0x60] ss:$12 sps:$4 sm:$0xff]   ;;  %v1675_v62 = vld [vmem:[%s2179_s14 + $0x7c] ss:$12 sps:$4 sm:$0xff]   ;;  %v1673_v63 = vld [vmem:[%s2179_s14 + $0x78] ss:$12 sps:$4 sm:$0xff]  }
  0xaf   : > { %v1678_v0 = vld [vmem:[%s2179_s14 + $0x94] ss:$12 sps:$4 sm:$0xff]   ;;  %v1676_v1 = vld [vmem:[%s2179_s14 + $0x90] ss:$12 sps:$4 sm:$0xff]   ;;  %v1681_v2 = vld [vmem:[%s2179_s14 + $0xac] ss:$12 sps:$4 sm:$0xff]  }
  0xb0   : > { %517 = vmatpush1.bf16.msra.mxu0 %v1603_v17  ;;  %768 = vmatpush1.bf16.msra.mxu1 %v1624_v27  ;;  %v1679_v3 = vld [vmem:[%s2179_s14 + $0xa8] ss:$12 sps:$4 sm:$0xff]   ;;  %v1684_v4 = vld [vmem:[%s2179_s14 + $0xc4] ss:$12 sps:$4 sm:$0xff]   ;;  %v1682_v5 = vld [vmem:[%s2179_s14 + $0xc0] ss:$12 sps:$4 sm:$0xff]  }
  0xb1   : > { %518 = vmatprep.subr.bf16.mxu0 %v1604_v20  ;;  %769 = vmatprep.subr.bf16.mxu1 %v1625_v28  ;;  %v1689_v6 = vld [vmem:[%s2179_s14 + $0xdc] ss:$12 sps:$4 sm:$0xff]   ;;  %v1687_v7 = vld [vmem:[%s2179_s14 + $0xd8] ss:$12 sps:$4 sm:$0xff]   ;;  %v1694_v8 = vld [vmem:[%s2179_s14 + $0xf4] ss:$12 sps:$4 sm:$0xff]  }
  0xb2   : > { %v1692_v9 = vld [vmem:[%s2179_s14 + $0xf0] ss:$12 sps:$4 sm:$0xff]   ;;  %v1699_v10 = vld [vmem:[%s2179_s14 + $0x10c] ss:$12 sps:$4 sm:$0xff]   ;;  %v1697_v11 = vld [vmem:[%s2179_s14 + $0x108] ss:$12 sps:$4 sm:$0xff]  }
  0xb3   : > { %v1704_v12 = vld [vmem:[%s2179_s14 + $0x124] ss:$12 sps:$4 sm:$0xff]   ;;  %v1702_v13 = vld [vmem:[%s2179_s14 + $0x120] ss:$12 sps:$4 sm:$0xff]   ;;  %v1709_v14 = vld [vmem:[%s2179_s14 + $0x13c] ss:$12 sps:$4 sm:$0xff]  }
  0xb4   : > { %519 = vmatpush1.bf16.msra.mxu0 %v1606_v21  ;;  %770 = vmatpush1.bf16.msra.mxu1 %v1627_v29  ;;  %v1707_v15 = vld [vmem:[%s2179_s14 + $0x138] ss:$12 sps:$4 sm:$0xff]   ;;  %v2214_v17 = vshrl.u32 %v416_v16, 7  ;;  %p382_p1 = scmp.lt.s32.totalorder %s2252_s9, 4  ;;  %s1510_s11 = smul.u32 24, %s2175_s23 }
  0xb5   : > { %520 = vmatprep.subr.bf16.mxu0 %v1607_v24  ;;  %771 = vmatprep.subr.bf16.mxu1 %v1628_v30  ;;  %v414_v19 = vld [vmem:[%s2321_s2] sm:$0x3]  ;;  %s1233_s20 = scalar_lea.sflag [#allocation4], %s2175_s23  ;;  %p2354_p3 = scmp.ne.s32.totalorder %s2340_s13, 0 }
  0xb6   : > { %v2217_v18 = vsub.s32 0, %v2214_v17  ;;  %v2223_v20 = vsub.s32 1, %v2214_v17  ;;  %s383_s10 = scalar_select %p382_p1, %s2252_s9, 4 }
  0xb7   : > { %s371_s17 = scalar_lea.vmem [#allocation10], %s1510_s11  ;;  %s1241_s22 = ssub.s32 (%p2354_p3), 5, %s2252_s9 }
  0xb8   : > { %521 = vmatpush1.bf16.msra.mxu0 %v1609_v25  ;;  %772 = vmatpush1.bf16.msra.mxu1 %v1630_v32  ;;  %v419_v21 = vrot.slane %v414_v19, %v2217_v18  ;;  %v423_v22 = vrot.slane %v414_v19, %v2223_v20  ;;  %s384_s16 = scalar_lea.vmem %s2325_s6, %s383_s10  ;;  %p1242_p5 = scmp.lt.s32.totalorder (%p2354_p3), %s1241_s22, 3 }
  0xb9   : > { %773 = vmatprep.subr.bf16.mxu1 %v1631_v33  ;;  %1145 = vmatprep.subr.bf16.mxu0 %v1660_v52  ;;  %v1717_v52 = vld [vmem:[%s2179_s14 + $0x168] ss:$12 sps:$4 sm:$0xff]  }
  0xbb   : > { %539 = vmatmul.mubr.bf16.vlgmr.msra.gmra.mrb[0].mxu0 %v397_v31 }
  0xbc   : > { %774 = vmatpush1.bf16.msra.mxu1 %v1633_v34  ;;  %1146 = vmatpush1.bf16.msra.mxu0 %v1658_v51  ;;  %v1686_v34 = vld [vmem:[%s2179_s14 + $0x8] ss:$12 sps:$4 sm:$0xff]   ;;  %v1720_v51 = vld [vmem:[%s2179_s14 + $0x170] ss:$12 sps:$4 sm:$0xff]  }
  0xbd   : > { %775 = vmatprep.subr.bf16.mxu1 %v1634_v35  ;;  %1147 = vmatprep.subr.bf16.mxu0 %v1663_v53  ;;  %v1721_v53 = vld [vmem:[%s2179_s14 + $0xb0] ss:$12 sps:$4 sm:$0xff]  }
  0xc0   : > { %776 = vmatpush1.bf16.msra.mxu1 %v1636_v36  ;;  %1148 = vmatpush1.bf16.msra.mxu0 %v1661_v54  ;;  %v1690_v36 = vld [vmem:[%s2179_s14 + $0xe0] ss:$12 sps:$4 sm:$0xff]   ;;  %v587_v54 = vld [vmem:[%s2323_s4] sm:$0x3] }
  0xc1   : > { %777 = vmatprep.subr.bf16.mxu1 %v1637_v37  ;;  %1149 = vmatprep.subr.bf16.mxu0 %v1666_v55  ;;  %v1691_v37 = vld [vmem:[%s2179_s14 + $0x20] ss:$12 sps:$4 sm:$0xff]   ;;  %v592_v55 = vrot.slane %v587_v54, %v2217_v18 }
  0xc4   : > { %778 = vmatpush1.bf16.msra.mxu1 %v1639_v38  ;;  %1150 = vmatpush1.bf16.msra.mxu0 %v1664_v57  ;;  %v1695_v38 = vld [vmem:[%s2179_s14 + $0xf8] ss:$12 sps:$4 sm:$0xff]  }
  0xc5   : > { %779 = vmatprep.subr.bf16.mxu1 %v1640_v39  ;;  %1151 = vmatprep.subr.bf16.mxu0 %v1669_v58  ;;  %v1696_v39 = vld [vmem:[%s2179_s14 + $0x38] ss:$12 sps:$4 sm:$0xff]  }
  0xc8   : > { %780 = vmatpush1.bf16.msra.mxu1 %v1642_v40  ;;  %1152 = vmatpush1.bf16.msra.mxu0 %v1667_v59  ;;  %v1700_v40 = vld [vmem:[%s2179_s14 + $0x110] ss:$12 sps:$4 sm:$0xff]  }
  0xc9   : > { %781 = vmatprep.subr.bf16.mxu1 %v1643_v41  ;;  %1153 = vmatprep.subr.bf16.mxu0 %v1672_v60  ;;  %v1701_v41 = vld [vmem:[%s2179_s14 + $0x50] ss:$12 sps:$4 sm:$0xff]  }
  0xcc   : > { %782 = vmatpush1.bf16.msra.mxu1 %v1645_v42  ;;  %1154 = vmatpush1.bf16.msra.mxu0 %v1670_v61  ;;  %v1705_v42 = vld [vmem:[%s2179_s14 + $0x128] ss:$12 sps:$4 sm:$0xff]  }
  0xcd   : > { %783 = vmatprep.subr.bf16.mxu1 %v1646_v43  ;;  %1155 = vmatprep.subr.bf16.mxu0 %v1675_v62  ;;  %v1706_v43 = vld [vmem:[%s2179_s14 + $0x68] ss:$12 sps:$4 sm:$0xff]  }
  0xd0   : > { %784 = vmatpush1.bf16.msra.mxu1 %v1648_v44  ;;  %1156 = vmatpush1.bf16.msra.mxu0 %v1673_v63  ;;  %v1710_v44 = vld [vmem:[%s2179_s14 + $0x140] ss:$12 sps:$4 sm:$0xff]  }
  0xd1   : > { %785 = vmatprep.subr.bf16.mxu1 %v1649_v45  ;;  %1157 = vmatprep.subr.bf16.mxu0 %v1678_v0  ;;  %v1711_v45 = vld [vmem:[%s2179_s14 + $0x80] ss:$12 sps:$4 sm:$0xff]  }
  0xd4   : > { %786 = vmatpush1.bf16.msra.mxu1 %v1651_v46  ;;  %1158 = vmatpush1.bf16.msra.mxu0 %v1676_v1  ;;  %v1714_v46 = vld [vmem:[%s2179_s14 + $0x154] ss:$12 sps:$4 sm:$0xff]  }
  0xd5   : > { %787 = vmatprep.subr.bf16.mxu1 %v1652_v47  ;;  %1159 = vmatprep.subr.bf16.mxu0 %v1681_v2  ;;  %v1715_v47 = vld [vmem:[%s2179_s14 + $0x158] ss:$12 sps:$4 sm:$0xff]  }
  0xd8   : > { %788 = vmatpush1.bf16.msra.mxu1 %v1654_v48  ;;  %1160 = vmatpush1.bf16.msra.mxu0 %v1679_v3  ;;  %v1712_v48 = vld [vmem:[%s2179_s14 + $0x150] ss:$12 sps:$4 sm:$0xff]  }
  0xd9   : > { %789 = vmatprep.subr.bf16.mxu1 %v1655_v49  ;;  %1161 = vmatprep.subr.bf16.mxu0 %v1684_v4  ;;  %v1716_v49 = vld [vmem:[%s2179_s14 + $0x98] ss:$12 sps:$4 sm:$0xff]  }
  0xdc   : > { %790 = vmatpush1.bf16.msra.mxu1 %v1657_v50  ;;  %1162 = vmatpush1.bf16.msra.mxu0 %v1682_v5  ;;  %v1719_v50 = vld [vmem:[%s2179_s14 + $0x16c] ss:$12 sps:$4 sm:$0xff]  }
  0xdd   : > { %1486 = vmatprep.subr.bf16.mxu1 %v1685_v56  ;;  %1163 = vmatprep.subr.bf16.mxu0 %v1689_v6  ;;  %v596_v56 = vrot.slane %v587_v54, %v2223_v20  ;;  %v872_v5 = vld [vmem:[%s384_s16] sm:$0x7]  ;;  %v884_v6 = vsub.s32 2, %v2214_v17 }
  0xe0   : > { %1164 = vmatpush1.bf16.msra.mxu0 %v1687_v7  ;;  %v877_v7 = vrot.slane %v872_v5, %v2217_v18 }
  0xe1   : > { %1165 = vmatprep.subr.bf16.mxu0 %v1694_v8  ;;  %v881_v8 = vrot.slane %v872_v5, %v2223_v20 }
  0xe4   : > { %1166 = vmatpush1.bf16.msra.mxu0 %v1692_v9 }
  0xe5   : > { %1167 = vmatprep.subr.bf16.mxu0 %v1699_v10 }
  0xe8   : > { %1168 = vmatpush1.bf16.msra.mxu0 %v1697_v11  ;;  %v885_v11 = vrot.slane %v872_v5, %v884_v6 }
  0xe9   : > { %1169 = vmatprep.subr.bf16.mxu0 %v1704_v12 }
  0xec   : > { %1170 = vmatpush1.bf16.msra.mxu0 %v1702_v13 }
  0xed   : > { %1171 = vmatprep.subr.bf16.mxu0 %v1709_v14 }
  0xf0   : > { %1172 = vmatpush1.bf16.msra.mxu0 %v1707_v15 }
  0xf1   : > { %1173 = vmatprep.subr.bf16.mxu0 %v1714_v46 }
  0xf4   : > { %1174 = vmatpush1.bf16.msra.mxu0 %v1712_v48 }
  0xf5   : > { %1175 = vmatprep.subr.bf16.mxu0 %v1719_v50 }
  0xf8   : > { %1176 = vmatpush1.bf16.msra.mxu0 %v1717_v52 }
 0x18e   : > { %v540_v23 = vpop.f32.mrb[0].mxu0 }
 0x18f   : > { %v541_v24 = vadd.f32 %v540_v23, %v419_v21  ;;  %v542_v25 = vpop.f32.mrb[1].mxu0 }
 0x190   : > { %v543_v26 = vadd.f32 %v542_v25, %v423_v22  ;;  %v544_v27 = vpop.f32.mrb[2].mxu0 }
 0x191   : > { %vm547_vm0 = vcmp.gt.f32.partialorder %v541_v24, 0.0  ;;  %v549_v28 = vmul.f32 0.01, %v541_v24  ;;  %v545_v29 = vpop.f32.mrb[3].mxu0 }
 0x192   : > { %vm548_vm1 = vcmp.gt.f32.partialorder %v543_v26, 0.0  ;;  %v550_v30 = vmul.f32 0.01, %v543_v26 }
 0x193   : > { %v551_v31 = vsel %vm547_vm0, %v541_v24, %v549_v28 }
 0x194   : > { %v552_v32 = vsel %vm548_vm1, %v543_v26, %v550_v30  ;;  %v553_v35 = vpack.c.bf16 %v551_v31, %v551_v31 }
 0x195   : > { %v554_v33 = vpack.c.bf16 %v552_v32, %v552_v32 }
 0x197   : > { %791 = vmatprep.mubr.bf16.mxu1 %v554_v33 }
 0x198   : > { %792 = vmatmul.mubr.bf16.vlgmr.msra.gmra.mrb[0].mxu1 %v553_v35 }
 0x199   : > { %1487 = vmatpush3.bf16.msra.mxu1 %v1686_v34 }
 0x19a   : > { %1488 = vmatprep.subr.bf16.mxu1 %v1690_v36 }
 0x19d   : > { %1489 = vmatpush3.bf16.msra.mxu1 %v1691_v37 }
 0x19e   : > { %1490 = vmatprep.subr.bf16.mxu1 %v1695_v38 }
 0x1a1   : > { %1491 = vmatpush3.bf16.msra.mxu1 %v1696_v39 }
 0x1a2   : > { %1492 = vmatprep.subr.bf16.mxu1 %v1700_v40 }
 0x1a5   : > { %1493 = vmatpush3.bf16.msra.mxu1 %v1701_v41 }
 0x1a6   : > { %1494 = vmatprep.subr.bf16.mxu1 %v1705_v42 }
 0x1a9   : > { %1495 = vmatpush3.bf16.msra.mxu1 %v1706_v43 }
 0x1aa   : > { %1496 = vmatprep.subr.bf16.mxu1 %v1710_v44 }
 0x1ad   : > { %1497 = vmatpush3.bf16.msra.mxu1 %v1711_v45 }
 0x1ae   : > { %1498 = vmatprep.subr.bf16.mxu1 %v1715_v47 }
 0x1b1   : > { %1499 = vmatpush3.bf16.msra.mxu1 %v1716_v49 }
 0x1b2   : > { %1500 = vmatprep.subr.bf16.mxu1 %v1720_v51 }
 0x1b5   : > { %1501 = vmatpush3.bf16.msra.mxu1 %v1721_v53 }
 0x26b   : > { %v793_v57 = vpop.f32.mrb[0].mxu1 }
 0x26c   : > { %v794_v58 = vadd.f32 %v793_v57, %v592_v55  ;;  %v795_v59 = vpop.f32.mrb[1].mxu1 }
 0x26d   : > { %v796_v60 = vadd.f32 %v795_v59, %v596_v56  ;;  %v797_v61 = vpop.f32.mrb[2].mxu1 }
 0x26e   : > { %vm800_vm2 = vcmp.gt.f32.partialorder %v794_v58, 0.0  ;;  %v802_v62 = vmul.f32 0.01, %v794_v58  ;;  %v798_v63 = vpop.f32.mrb[3].mxu1 }
 0x26f   : > { %vm801_vm3 = vcmp.gt.f32.partialorder %v796_v60, 0.0  ;;  %v803_v0 = vmul.f32 0.01, %v796_v60 }
 0x270   : > { %v804_v1 = vsel %vm800_vm2, %v794_v58, %v802_v62 }
 0x271   : > { %v805_v2 = vsel %vm801_vm3, %v796_v60, %v803_v0  ;;  %v806_v4 = vpack.c.bf16 %v804_v1, %v804_v1 }
 0x272   : > { %v807_v3 = vpack.c.bf16 %v805_v2, %v805_v2 }
 0x274   : > { %1177 = vmatprep.mubr.bf16.mxu0 %v807_v3  ;;  %1218 = vmatprep.mubr.bf16.mxu1 %v807_v3 }
 0x275   : > { %1178 = vmatmul.mubr.bf16.vlgmr.msra.gmra.mrb[4].mxu0 %v806_v4  ;;  %1219 = vmatmul.mubr.bf16.vlgmr.msra.gmra.mrb[4].mxu1 %v806_v4 }
 0x348   : > { %v1179_v9 = vpop.f32.mrb[4].mxu0  ;;  %v1502_v10 = vpop.f32.mrb[4].mxu1 }
 0x349   : > { %v1180_v12 = vadd.f32 %v1179_v9, %v877_v7  ;;  %v1181_v13 = vpop.f32.mrb[5].mxu0  ;;  %v1503_v14 = vpop.f32.mrb[5].mxu1 }
 0x34a   : > { %v1182_v15 = vadd.f32 %v1181_v13, %v881_v8  ;;  %v1504_v16 = vadd.f32 %v1503_v14, %v1502_v10  ;;  %v1183_v19 = vpop.f32.mrb[6].mxu0  ;;  %v1505_v21 = vpop.f32.mrb[6].mxu1 }
 0x34b   : > { %1722 = vtanh.f32 %v1180_v12  ;;  %v1184_v22 = vpop.f32.mrb[7].mxu0  ;;  %v1506_v23 = vpop.f32.mrb[7].mxu1 }
 0x34c   : > { %1724 = vtanh.f32 %v1182_v15  ;;  %v1221_v17 = vadd.f32 %v1504_v16, %v885_v11 }
 0x34e   : > { %1726 = vtanh.f32 %v1221_v17 }
 0x353   : > { %1239 = sbr.rel (!%p2354_p3) target bundleno = 885 (0x375), region = 68 }
 0x355   : > { %v1723_v18 = vpop.eup %1722 }
 0x356   : > { %v1725_v20 = vpop.eup %1724  ;;  %1229 = vst [vmem:[%s371_s17] sm:$0xff] %v1723_v18 }
 0x357   : > { %1230 = vst [vmem:[%s371_s17 + $0x8] sm:$0xff] %v1725_v20 }
 0x358   : > { %v1727_v24 = vpop.eup %1726 }
 0x359   : > { %1231 = vst [vmem:[%s371_s17 + $0x10] sm:$0xff] %v1727_v24 }
 0x35a   : > { %s2366_s22 = smov (!%p1242_p5, %s1241_s22), 3 }
 0x35b   : > { %s2267_s30 = sshll.u32 %s2366_s22, 7 }
 0x35c   : > { %s1246_s15 = ssub.s32 384, %s2267_s30 }
 0x35d   : > { %1247 = vsyncadd %s1233_s20, %s1246_s15  ;;  %p1476_p6 = scmp.ne.s32.totalorder %s2267_s30, 0  ;;  %s1485_s8 = smul.u32 384, %s1987_s28 }
 0x35e   : > { %s1253_s14 = sshll.u32 %s371_s17, 4  ;;  %s1925_s24 = smov [#allocation10]   ;;  %s1254_s14 = int_to_ptr.vmem [resolvable:$true] %s1253_s14 }
 0x35f   : > { %s2277_s19 = scalar_lea.hbm %s2326_s7, %s1485_s8  ;;  %s1840_s21 = scalar_lea.vmem %s1254_s14, %s2267_s30 }
 0x360   : > { %p1841_p11 = scmp.ne.s32.totalorder %s1254_s14, %s1840_s21  ;;  %s1844_s9 = sshll.u32 %s1925_s24, 4  ;;  %s1845_s9 = int_to_ptr.vmem [resolvable:$false] %s1844_s9 }
 0x361   : > { %s1846_s10 = scalar_lea.vmem %s1845_s9, 768  ;;  %p1847_p12 = scmp.lt.s32.totalorder %s1254_s14, %s1845_s9 }
 0x362   : > { %p1842_p13 = pnand %p1841_p11, %p1476_p6  ;;  %p1848_p7 = scmp.lt.s32.totalorder %s1846_s10, %s1840_s21 }
 0x364   : > { %p1843_p0 = pneg %p1842_p13  ;;  %p1849_p8 = por %p1848_p7, %p1847_p12 }
 0x366   : > { %p1850_p9 = pnand %p1849_p8, %p1843_p0 }
 0x368   : > { %1853 = shalt.err (!%p1850_p9)
}
 0x369   : > { %s1854_s28 = scalar_lea.hbm %s2277_s19, %s2267_s30  ;;  %s1858_s16 = scalar_lea.hbm %s2326_s7, 640 }
 0x36a   : > { %p1855_p10 = scmp.ne.s32.totalorder %s2277_s19, %s1854_s28  ;;  %p1859_p3 = scmp.lt.u32.totalorder %s2277_s19, %s2326_s7 }
 0x36b   : > { %p1860_p5 = scmp.lt.u32.totalorder %s1858_s16, %s1854_s28  ;;  %p1862_p13 = scmp.lt.u32.totalorder %s1854_s28, %s2277_s19 }
 0x36c   : > { %p1856_p2 = pnand %p1855_p10, %p1476_p6 }
 0x36d   : > { %p1861_p11 = por %p1860_p5, %p1859_p3 }
 0x36e   : > { %p1857_p1 = pneg %p1856_p2 }
 0x36f   : > { %p1863_p0 = por %p1862_p13, %p1861_p11 }
 0x371   : > { %p1864_p12 = pnand %p1863_p0, %p1857_p1 }
 0x373   : > { %1867 = shalt.err (!%p1864_p12)
}
 0x374   : > { %1256 = dma.vmem_to_hbm [thread:$0]  (%p1476_p6), %s1254_s14, %s2267_s30, %s2277_s19, %s1233_s20  }
 0x375 PF: > { %s2355_s22 = sld [smem:[#allocation15_spill]]  ;;  %s2356_s15 = sld [smem:[#allocation18_spill]] }
 0x37b   : > { %s1265_s8 = sand.u32 1, %s2355_s22   ;;  %p2357_p7 = scmp.ne.s32.totalorder %s2356_s15, 0 }
 0x37c   : > { %s1266_s13 = scalar_lea.sflag [#allocation4], %s1265_s8 }
 0x37d   : > { %p1536_p8 = pnand %p1368_p4, %p2357_p7 }
 0x37f   : > { %1897 = dma.done.wait (!%p1536_p8), %s1266_s13, 384  }
 0x380   : > { %1899 = vsyncadd (!%p1536_p8), %s1266_s13, 4294966912  ;;  %s2358_s27 = sld [smem:[#allocation16_spill]]  ;;  %s2359_s12 = sld [smem:[#allocation17_spill]] }
 0x381   : > { %s2360_s24 = smov %s1906_s25  ;;  %s2361_s25 = smov %s1910_s26 }
 0x386   : > { %p22_p9 = scmp.ge.s32.totalorder %s2358_s27, 4   ;;  %s2362_s26 = smov %s2359_s12 }
 0x388   :  { %24 = sbr.rel (!%p22_p9) target bundleno = 7 (0x7), region = 109 }
 0x38f   :  { %1271 = vsyncpa [#allocation3], 1 }
 0x390   :  { %1273 = vsyncpa [#allocation3 + $0x1], 1 }
 0x391   :  { %1274 = vsyncpa [#allocation6], 1 }
 0x392   :  { %1275 = vsyncpa [#allocation9], 1 }
 0x393   :  { %1277 = vsyncpa [#allocation9 + $0x1], 1 }
 0x394   :  { %1278 = vsyncpa [#allocation4], 1 }
 0x395   :  { %1280 = vsyncpa [#allocation4 + $0x1], 1 }

</bundles_post_ra>
